<compile_context>
chip_gen: v7x
topology: tpu7x:2x2x1
jax: 0.10.0
libtpu: 0.0.40
codegen_flags: <defaults>
</compile_context>

<pallas_src>
import functools

import jax
import jax.numpy as jnp
from jax.experimental import pallas as pl
from jax.experimental.pallas import tpu as pltpu

_LANE = 128
_SUB = 8
_MAX_TILE_ROWS = 8192          # (8192,128) f32 = 4 MiB tile; 8 MiB double-buffered
_SMALL_N = _SUB * _LANE        # below one vreg slab -> plain jnp.mean is faster


def _round_up(a, b):
    return (a + b - 1) // b * b


def _cores_per_chip():
    """2 for chips whose JAX device spans two TensorCores (megacore / v7x), else 1."""
    try:
        dev = jax.devices()[0]
        if dev.platform != "tpu":
            return 1
        kind = dev.device_kind.lower()
    except Exception:  # pragma: no cover - conservative fallback
        return 1
    # v5e ("v5 lite"/"v5e") and v6e are single-TensorCore: extra core axis is
    # pure overhead there, so only multi-TC generations get the split.
    if ("v7" in kind) or ("v4" in kind) or ("v5p" in kind):
        return 2
    return 1


def _sum_kernel(x_ref, o_ref, *, tile_rows, steps_per_core, num_blocks,
                valid_rows, ncores):
    """Streaming sum of a lane-dense (rows, 128) slab.

    Grid = (core_chunk, step).  Each core chunk owns one (1, 8, 128) output
    block that acts as its accumulator (resident across the "arbitrary" step
    axis).  Steady-state steps are a bare load + cast + vreg-fold add; only the
    ragged boundary block is masked, and clamped duplicate blocks are skipped.
    """
    c = pl.program_id(0)
    s = pl.program_id(1)

    @pl.when(s == 0)
    def _init():
        o_ref[...] = jnp.zeros_like(o_ref)

    blk = c * steps_per_core + s
    last_blk = num_blocks - 1
    rows_in_last = valid_rows - last_blk * tile_rows          # static Python int
    ragged = rows_in_last != tile_rows                        # static Python bool
    has_dup = (ncores * steps_per_core) > num_blocks          # static Python bool

    def accumulate_full():
        x = x_ref[...].astype(jnp.float32)
        # Groups whole (8,128) vreg tiles -> pure VPU adds, no relayout.
        o_ref[...] += jnp.sum(x.reshape(-1, _SUB, _LANE), axis=0).reshape(o_ref.shape)

    def accumulate_masked():
        x = x_ref[...].astype(jnp.float32)
        # Single iota compared against a static per-block bound (boundary only).
        row_ids = jax.lax.broadcasted_iota(jnp.int32, x.shape, 0)
        x = jnp.where(row_ids < rows_in_last, x, 0.0)
        o_ref[...] += jnp.sum(x.reshape(-1, _SUB, _LANE), axis=0).reshape(o_ref.shape)

    if not ragged and not has_dup:
        accumulate_full()                       # bare hot path, no predicate
    elif not ragged:
        pl.when(blk <= last_blk)(accumulate_full)
    else:
        pl.when(blk < last_blk)(accumulate_full)
        pl.when(blk == last_blk)(accumulate_masked)
        # blk > last_blk (clamped duplicate blocks) contribute nothing.


def _pallas_sum_2d(x2):
    """Sum all elements of a lane-dense (rows, 128) array via the Pallas kernel."""
    rows = x2.shape[0]

    # Align tile rows to the dtype's sublane packing (8 f32 / 16 bf16 / 32 int8)
    # so the in-kernel fold stays pure vreg adds.
    itemsize = jnp.dtype(x2.dtype).itemsize
    sub_pack = _SUB * max(1, 4 // max(1, itemsize))
    tile_rows = min(_MAX_TILE_ROWS, _round_up(rows, sub_pack))
    num_blocks = pl.cdiv(rows, tile_rows)

    ncores = _cores_per_chip() if num_blocks > 1 else 1
    steps_per_core = pl.cdiv(num_blocks, ncores)

    kernel = functools.partial(
        _sum_kernel,
        tile_rows=tile_rows,
        steps_per_core=steps_per_core,
        num_blocks=num_blocks,
        valid_rows=rows,
        ncores=ncores,
    )

    if ncores * steps_per_core > num_blocks:
        # Short core chunk re-reads the last block; the kernel skips it.
        in_map = lambda c, s: (jnp.minimum(c * steps_per_core + s, num_blocks - 1), 0)
    else:
        in_map = lambda c, s: (c * steps_per_core + s, 0)

    acc = pl.pallas_call(
        kernel,
        out_shape=jax.ShapeDtypeStruct((ncores, _SUB, _LANE), jnp.float32),
        grid_spec=pltpu.PrefetchScalarGridSpec(
            num_scalar_prefetch=0,
            grid=(ncores, steps_per_core),
            in_specs=[pl.BlockSpec((tile_rows, _LANE), in_map)],
            out_specs=pl.BlockSpec((1, _SUB, _LANE), lambda c, s: (c, 0, 0)),
        ),
        compiler_params=pltpu.CompilerParams(
            dimension_semantics=("parallel", "arbitrary")),
    )(x2)

    # Final cross-lane/sublane reduce happens once, outside the kernel.
    return jnp.sum(acc)


def nll_forward(x):
    """Pallas equivalent of NLL.forward: mean over all elements of x."""
    n = x.size
    orig_dtype = x.dtype
    xf = jnp.reshape(x, (-1,))

    if n < _SMALL_N:
        # Tiny input: pallas_call fixed overhead dominates; use XLA's fused mean.
        mean = jnp.mean(xf.astype(jnp.float32))
    else:
        aligned = (n // _LANE) * _LANE
        if aligned == n:
            main = xf.reshape(-1, _LANE)       # zero-copy lane-dense view
            total = _pallas_sum_2d(main)
        else:
            # Ragged tail (< 128 elements) summed outside the kernel; avoids the
            # previous full-array jnp.pad copy.  (The prefix slice still costs one
            # copy for unaligned n; acceptable for this rare path.)
            main = jax.lax.slice(xf, (0,), (aligned,)).reshape(-1, _LANE)
            total = _pallas_sum_2d(main) + jnp.sum(xf[aligned:].astype(jnp.float32))
        mean = total / jnp.float32(n)

    if jnp.issubdtype(orig_dtype, jnp.floating):
        mean = mean.astype(orig_dtype)
    return mean


if __name__ == "__main__":
    key = jax.random.PRNGKey(0)
    # NCHW input consistent with a typical image batch fed to this loss.
    x = jax.random.normal(key, (2, 4, 16, 16), dtype=jnp.float32)

    result = jax.block_until_ready(nll_forward(x))

    expected = jnp.mean(x)
    assert jnp.allclose(result, expected, atol=1e-5, rtol=1e-5), (result, expected)
    print("KERNEL_OK")
</pallas_src>

<mosaic_0001>
module attributes {stable_mosaic.version = 11 : i64} {
  func.func @_sum_kernel(%arg0: i32, %arg1: i32, %arg2: memref<16x128xf32, #tpu.memory_space<vmem>>, %arg3: memref<1x8x128xf32, #tpu.memory_space<vmem>>) attributes {dimension_semantics = [#tpu.dimension_semantics<parallel>, #tpu.dimension_semantics<arbitrary>], iteration_bounds = array<i64: 1, 1>, scalar_prefetch = 0 : i64, scratch_operands = 0 : i64, tpu.core_type = #tpu.core_type<tc>, window_params = [{transform_indices = @transform_0, window_bounds = array<i64: 16, 128>}, {transform_indices = @transform_1, window_bounds = array<i64: 1, 8, 128>}]} {
    %c0_i32 = arith.constant 0 : i32
    %0 = arith.cmpi eq, %arg1, %c0_i32 : i32
    %1 = arith.extui %0 : i1 to i32
    %c0_i32_0 = arith.constant 0 : i32
    %2 = arith.cmpi ne, %1, %c0_i32_0 : i32
    scf.if %2 {
      %cst_8 = arith.constant 0.000000e+00 : f32
      %10 = vector.broadcast %cst_8 : f32 to vector<1x8x128xf32>
      %c0_9 = arith.constant 0 : index
      %c0_10 = arith.constant 0 : index
      %c0_11 = arith.constant 0 : index
      %11 = vector.load %arg3[%c0_9, %c0_10, %c0_11] : memref<1x8x128xf32, #tpu.memory_space<vmem>>, vector<1x8x128xf32>
      tpu.vector_store %arg3[%c0_9, %c0_10, %c0_11], %10 {strides = array<i32>} : memref<1x8x128xf32, #tpu.memory_space<vmem>>, vector<1x8x128xf32>,
    } else {
    }
    %c0 = arith.constant 0 : index
    %c0_1 = arith.constant 0 : index
    %3 = vector.load %arg2[%c0, %c0_1] : memref<16x128xf32, #tpu.memory_space<vmem>>, vector<16x128xf32>
    %c0_2 = arith.constant 0 : index
    %c0_3 = arith.constant 0 : index
    %c0_4 = arith.constant 0 : index
    %4 = vector.load %arg3[%c0_2, %c0_3, %c0_4] : memref<1x8x128xf32, #tpu.memory_space<vmem>>, vector<1x8x128xf32>
    %5 = vector.shape_cast %3 : vector<16x128xf32> to vector<2x8x128xf32>
    %cst = arith.constant dense<0.000000e+00> : vector<8x128xf32>
    %6 = vector.multi_reduction <add>, %5, %cst [0] : vector<2x8x128xf32> to vector<8x128xf32>
    %7 = vector.shape_cast %6 : vector<8x128xf32> to vector<1x8x128xf32>
    %8 = arith.addf %4, %7 : vector<1x8x128xf32>
    %c0_5 = arith.constant 0 : index
    %c0_6 = arith.constant 0 : index
    %c0_7 = arith.constant 0 : index
    %9 = vector.load %arg3[%c0_5, %c0_6, %c0_7] : memref<1x8x128xf32, #tpu.memory_space<vmem>>, vector<1x8x128xf32>
    tpu.vector_store %arg3[%c0_5, %c0_6, %c0_7], %8 {strides = array<i32>} : memref<1x8x128xf32, #tpu.memory_space<vmem>>, vector<1x8x128xf32>,
    return
  }
  func.func @transform_0(%arg0: i32, %arg1: i32) -> (i32, i32) {
    %c1_i32 = arith.constant 1 : i32
    %0 = arith.muli %arg0, %c1_i32 : i32
    %1 = arith.addi %0, %arg1 : i32
    %c0_i32 = arith.constant 0 : i32
    %c0_i32_0 = arith.constant 0 : i32
    return %1, %c0_i32 : i32, i32
  }
  func.func @transform_1(%arg0: i32, %arg1: i32) -> (i32, i32, i32) {
    %c0_i32 = arith.constant 0 : i32
    %c0_i32_0 = arith.constant 0 : i32
    %c0_i32_1 = arith.constant 0 : i32
    return %arg0, %c0_i32, %c0_i32_0 : i32, i32, i32
  }
}

</mosaic_0001>

<bundles_post_ra>
// kernel: tpu_custom_call.1
= control target key start
LH: loop header
LB: loop body
LE: loop exit
PB: predicated region body
PF: predicated region fallthrough
CT: control target
= control target key end

     0   :  { %6 = vsyncpa [#allocation3], 0  ;;  %s146_s0 = inlined_call_operand.hbm [shape: f32[16,128], index: 0, kind: input, shape index: {}]   ;;  %s147_s1 = inlined_call_operand.hbm [shape: f32[1,8,128], index: 1, kind: output, shape index: {}]  }
   0x1   :  { %7 = vsyncpa [#allocation4], 0  ;;  %s108_s6 = smov [#allocation2]   ;;  %s60_s10 = scalar_lea.hbm %s146_s0, 256 }
   0x2   :  { %s17_s7 = sshll.u32 %s108_s6, 4  ;;  %p61_p0 = scmp.ne.s32.totalorder %s146_s0, %s60_s10  ;;  %s18_s7 = int_to_ptr.vmem [resolvable:$true] %s17_s7 }
   0x3   :  { %p64_p1 = scmp.lt.u32.totalorder %s60_s10, %s146_s0 }
   0x5   :  { %p66_p2 = pnand %p64_p1, %p61_p0 }
   0x7   :  { %69 = shalt.err (!%p66_p2)
}
   0x8   :  { %s70_s15 = scalar_lea.vmem %s18_s7, 256  ;;  %p75_p4 = scmp.lt.s32.totalorder %s18_s7, %s18_s7 }
   0x9   :  { %p71_p3 = scmp.ne.s32.totalorder %s18_s7, %s70_s15  ;;  %p76_p5 = scmp.lt.s32.totalorder %s70_s15, %s70_s15 }
   0xb   :  { %p77_p6 = por %p76_p5, %p75_p4 }
   0xd   :  { %p78_p7 = pnand %p77_p6, %p71_p3 }
   0xf   :  { %81 = shalt.err (!%p78_p7)
}
  0x10   :  { %s109_s16 = smov 128   ;;  %s110_s17 = smov 8  }
  0x11   :  { %23 = dma.hbm_to_vmem [thread:$0]  %s146_s0, 256, %s18_s7, [#allocation3], %s109_s16, %s109_s16, %s110_s17  }
  0x12   :  { %104 = dma.done.wait [#allocation3], 256  }
  0x13   :  { %105 = vsyncadd [#allocation3], 4294967040  ;;  %v34_v0 = vld [vmem:[#allocation2] sm:$0xff]  ;;  %v35_v1 = vld [vmem:[#allocation2 + $0x8] sm:$0xff]  ;;  %s111_s20 = smov [#allocation5]  }
  0x14   :  { %s46_s21 = sshll.u32 %s111_s20, 4  ;;  %v37_v2 = vadd.f32 %v35_v1, %v34_v0  ;;  %s47_s21 = int_to_ptr.vmem [resolvable:$true] %s46_s21 }
  0x15   :  { %s82_s22 = scalar_lea.vmem %s47_s21, 128  ;;  %p87_p9 = scmp.lt.s32.totalorder %s47_s21, %s47_s21 }
  0x16   :  { %39 = vst [vmem:[#allocation5] sm:$0xff] %v37_v2  ;;  %p83_p8 = scmp.ne.s32.totalorder %s47_s21, %s82_s22  ;;  %p88_p10 = scmp.lt.s32.totalorder %s82_s22, %s82_s22 }
  0x18   :  { %p89_p11 = por %p88_p10, %p87_p9 }
  0x1a   :  { %p90_p12 = pnand %p89_p11, %p83_p8 }
  0x1c   :  { %93 = shalt.err (!%p90_p12)
}
  0x1d   :  { %s94_s0 = scalar_lea.hbm %s147_s1, 128 }
  0x1e   :  { %p95_p13 = scmp.ne.s32.totalorder %s147_s1, %s94_s0  ;;  %p98_p0 = scmp.lt.u32.totalorder %s94_s0, %s147_s1 }
  0x20   :  { %p100_p1 = pnand %p98_p0, %p95_p13 }
  0x22   :  { %103 = shalt.err (!%p100_p1)
}
  0x23   :  { %49 = dma.vmem_to_hbm [thread:$0]  %s47_s21, 128, %s147_s1, [#allocation4]  }
  0x24   :  { %106 = dma.done.wait [#allocation4], 128  }
  0x25   :  { %107 = vsyncadd [#allocation4], 4294967168 }
  0x26   :  { %53 = vsyncpa [#allocation3], 1 }
  0x27   :  { %54 = vsyncpa [#allocation4], 1 }

</bundles_post_ra>
